<compile_context>
chip_gen: v6e
topology: v6e:2x2x1
jax: 0.10.0
libtpu: 0.0.40
codegen_flags: <defaults>
</compile_context>

<pallas_src>
import math
import numpy as np
import jax
import jax.numpy as jnp
from jax.experimental import pallas as pl
from jax.experimental.pallas import tpu as pltpu


# ---------------------------------------------------------------------------
# Deterministic parameter construction (setup-time numpy "glue", mirrors
# inv_mel_filter / inv_MelTransform.__init__; not kernel work).
# ---------------------------------------------------------------------------
def _hz_to_mel_htk(hz):
    return 2595.0 * np.log10(1.0 + np.asarray(hz, dtype=np.float64) / 700.0)


def _mel_to_hz_htk(mel):
    return 700.0 * (10.0 ** (np.asarray(mel, dtype=np.float64) / 2595.0) - 1.0)


def _mel_filterbank_htk(sr, n_fft, n_mels, fmin, fmax, slaney_norm=False):
    """librosa.filters.mel(sr, n_fft, n_mels, fmin, fmax, htk=True,
    norm='slaney' if slaney_norm else None)."""
    n_bins = n_fft // 2 + 1
    fftfreqs = np.linspace(0.0, sr / 2.0, n_bins)
    min_mel = _hz_to_mel_htk(fmin)
    max_mel = _hz_to_mel_htk(fmax)
    mels = np.linspace(min_mel, max_mel, n_mels + 2)
    mel_f = _mel_to_hz_htk(mels)

    fdiff = np.diff(mel_f)
    ramps = mel_f[:, None] - fftfreqs[None, :]
    weights = np.zeros((n_mels, n_bins), dtype=np.float64)
    for i in range(n_mels):
        lower = -ramps[i] / fdiff[i]
        upper = ramps[i + 2] / fdiff[i + 1]
        weights[i] = np.maximum(0.0, np.minimum(lower, upper))
    if slaney_norm:
        enorm = 2.0 / (mel_f[2:n_mels + 2] - mel_f[:n_mels])
        weights *= enorm[:, None]
    return weights  # (n_mels, n_bins)


def inv_mel_filter(frame_len, round_pow_of_two=True, num_bins=None, sr=16000,
                   num_mels=80, fmin=0.0, fmax=None, norm=False):
    """Pseudo-inverse HTK mel filterbank, (num_freq_bins, num_mels), float32."""
    if num_bins is None:
        N = 2 ** math.ceil(math.log2(frame_len)) if round_pow_of_two else frame_len
    else:
        N = (num_bins - 1) * 2
    freq_upper = sr // 2
    if fmax is None:
        fmax = freq_upper
    else:
        fmax = min(fmax + freq_upper if fmax < 0 else fmax, freq_upper)
    fmin = max(0, fmin)
    mel = _mel_filterbank_htk(sr, N, num_mels, fmin, fmax, slaney_norm=norm)
    inv_mel = np.linalg.pinv(mel)  # (num_freq_bins, num_mels) = (B, F)
    return np.asarray(inv_mel, dtype=np.float32)


def make_inv_mel_params(frame_len, round_pow_of_two=True, sr=16000,
                        num_mels=40, fmin=0.0, fmax=None, norm=False):
    """Module __init__ equivalent: build filters once, pre-transpose for the kernel.

    Returns (filters (B, F), filters_t (F, B)) as device arrays.
    """
    # TODO(synk): the `mel_matrix` (torch.load from file) init path is not supported here.
    filters_np = inv_mel_filter(frame_len, round_pow_of_two=round_pow_of_two,
                                sr=sr, num_mels=num_mels, fmin=fmin, fmax=fmax,
                                norm=norm)
    filters_t_np = np.ascontiguousarray(filters_np.T)  # (F, B), transposed ONCE at init
    return jnp.asarray(filters_np), jnp.asarray(filters_t_np)


# ---------------------------------------------------------------------------
# Pallas kernel: out_tile = x_tile @ W^T   (tf.linear with no bias)
# ---------------------------------------------------------------------------
def _inv_mel_kernel(x_ref, wt_ref, o_ref):
    # x_ref: (TM, F)   wt_ref: (F, B)   o_ref: (TM, B)
    o_ref[...] = jnp.dot(
        x_ref[...], wt_ref[...],
        preferred_element_type=jnp.float32,
        precision=jax.lax.Precision.HIGHEST,   # f32 MXU passes, PyTorch parity
    ).astype(o_ref.dtype)


def _round_up(x, m):
    return ((x + m - 1) // m) * m


def inv_mel_transform(linear, filters_t, *, tm=4096, use_pallas=None):
    """
    Args:
        linear:     N x (C) x T x F  (F == filters_t.shape[0], the mel dimension)
        filters_t:  (F, B) pre-transposed pseudo-inverse mel matrix (filters.T)
        tm:         requested row-tile size (rounded/clamped internally)
        use_pallas: None = auto (fast XLA path for small M), True/False = force
    Returns:
        N x (C) x T x B
    """
    if linear.ndim not in (3, 4):
        raise RuntimeError(
            f"MelTransform expect 3/4D tensor, but got {linear.ndim} instead")
    lead = linear.shape[:-1]
    F = linear.shape[-1]
    assert filters_t.shape[0] == F, "feature dim mismatch"
    B = filters_t.shape[1]

    x2d = linear.reshape(-1, F)          # flatten leading dims (row-independent)
    M = x2d.shape[0]

    # Small-M fast path: with <2 grid steps there is no pipelining to exploit
    # and the pallas_call launch + single-step overhead dominates.
    if use_pallas is None:
        use_pallas = M >= 2 * tm
    if not use_pallas:
        out2d = jnp.dot(x2d, filters_t, precision=jax.lax.Precision.HIGHEST)
        return out2d.reshape(*lead, B)

    # --- Row-tile selection -------------------------------------------------
    # Multiple of 8 (sublane), never larger than M (rounded up), and capped so
    # the grid has >= ~4 steps (v7x megacore load balance across 2 TCs).
    tm_eff = min(tm, _round_up(M, 8))
    tm_eff = min(tm_eff, max(8, _round_up(pl.cdiv(M, 4), 8)))
    grid = (pl.cdiv(M, tm_eff),)

    # --- VMEM accounting with the PADDED layout ------------------------------
    # f32 lanes pad F->ceil(F/128)*128 and B->ceil(B/128)*128 in VMEM.
    bpe = 4
    f_pad = _round_up(F, 128)
    b_pad = _round_up(B, 128)
    per_step = tm_eff * (f_pad + b_pad) * bpe            # one input + one output tile
    w_bytes = _round_up(F, 8) * b_pad * bpe              # resident weight
    vmem_bytes = 2 * per_step + 2 * w_bytes + (4 << 20)  # double-buffered + margin
    vmem_bytes = min(max(vmem_bytes, 32 << 20), 48 << 20)  # safe on 64 MiB v7x VMEM

    cost = pl.CostEstimate(
        flops=2 * M * F * B,
        transcendentals=0,
        bytes_accessed=bpe * (M * F + F * B + M * B),
    )

    out2d = pl.pallas_call(
        _inv_mel_kernel,
        out_shape=jax.ShapeDtypeStruct((M, B), linear.dtype),
        grid_spec=pl.GridSpec(
            grid=grid,
            in_specs=[
                # Row tiles of the input stream through VMEM (double-buffered).
                pl.BlockSpec((tm_eff, F), lambda i: (i, 0)),
                # Weight: constant block index -> loaded once, stays resident.
                pl.BlockSpec((F, B), lambda i: (0, 0)),
            ],
            # Full-width (B=129) contiguous output block; do NOT pad to 256
            # lanes (output is ~76% of HBM traffic on this HBM-bound kernel).
            out_specs=pl.BlockSpec((tm_eff, B), lambda i: (i, 0)),
        ),
        compiler_params=pltpu.CompilerParams(
            # Independent row tiles: shard across TensorCores on v7x megacore.
            dimension_semantics=("parallel",),
            vmem_limit_bytes=int(vmem_bytes),
        ),
        cost_estimate=cost,
    )(x2d, filters_t)
    return out2d.reshape(*lead, B)


# ---------------------------------------------------------------------------
# Demo / self-test
# ---------------------------------------------------------------------------
if __name__ == "__main__":
    # Module config (small): frame_len=256 -> FFT size 256 -> 129 freq bins.
    frame_len = 256
    sr = 16000
    num_mels = 40

    filters, filters_t = make_inv_mel_params(
        frame_len, round_pow_of_two=True, sr=sr, num_mels=num_mels)
    B, F = filters.shape  # (129, 40)

    key = jax.random.PRNGKey(0)
    k4, k3, kb = jax.random.split(key, 3)

    # 1) Small 4D input: N x C x T x F (auto -> fast XLA path).
    x4 = jax.random.normal(k4, (2, 2, 8, num_mels), dtype=jnp.float32)
    out4 = jax.block_until_ready(inv_mel_transform(x4, filters_t))
    ref4 = jnp.einsum("nctf,bf->nctb", x4, filters)
    assert out4.shape == (2, 2, 8, B), out4.shape
    np.testing.assert_allclose(np.asarray(out4), np.asarray(ref4),
                               rtol=1e-5, atol=1e-5)

    # 2) Small 3D input with M not a multiple of the tile, forced through the
    #    Pallas kernel to exercise boundary-tile masking.
    x3 = jax.random.normal(k3, (2, 13, num_mels), dtype=jnp.float32)
    out3 = jax.block_until_ready(inv_mel_transform(x3, filters_t, use_pallas=True))
    ref3 = jnp.einsum("ntf,bf->ntb", x3, filters)
    assert out3.shape == (2, 13, B), out3.shape
    np.testing.assert_allclose(np.asarray(out3), np.asarray(ref3),
                               rtol=1e-5, atol=1e-5)

    # 3) Larger 4D input (M = 8192) -> auto path takes the tiled Pallas kernel
    #    (tm capped to 2048, grid=(4,)).
    xb = jax.random.normal(kb, (2, 2, 2048, num_mels), dtype=jnp.float32)
    outb = jax.block_until_ready(inv_mel_transform(xb, filters_t))
    refb = jnp.einsum("nctf,bf->nctb", xb, filters)
    assert outb.shape == (2, 2, 2048, B), outb.shape
    np.testing.assert_allclose(np.asarray(outb), np.asarray(refb),
                               rtol=1e-5, atol=1e-5)

    print("KERNEL_OK")
</pallas_src>

<mosaic_0001>
module attributes {stable_mosaic.version = 11 : i64} {
  func.func @_inv_mel_kernel(%arg0: i32, %arg1: memref<8x40xf32, #tpu.memory_space<vmem>>, %arg2: memref<40x129xf32, #tpu.memory_space<vmem>>, %arg3: memref<8x129xf32, #tpu.memory_space<vmem>>) attributes {dimension_semantics = [#tpu.dimension_semantics<parallel>], iteration_bounds = array<i64: 4>, scalar_prefetch = 0 : i64, scratch_operands = 0 : i64, tpu.core_type = #tpu.core_type<tc>, window_params = [{transform_indices = @transform_0, window_bounds = array<i64: 8, 40>}, {pipeline_mode = #tpu.pipeline_mode<synchronous>, transform_indices = @transform_1, window_bounds = array<i64: 40, 129>}, {transform_indices = @transform_2, window_bounds = array<i64: 8, 129>}]} {
    %c0 = arith.constant 0 : index
    %c0_0 = arith.constant 0 : index
    %0 = vector.load %arg1[%c0, %c0_0] : memref<8x40xf32, #tpu.memory_space<vmem>>, vector<8x40xf32>
    %c0_1 = arith.constant 0 : index
    %c0_2 = arith.constant 0 : index
    %1 = vector.load %arg2[%c0_1, %c0_2] : memref<40x129xf32, #tpu.memory_space<vmem>>, vector<40x129xf32>
    %cst = arith.constant dense<0.000000e+00> : vector<8x129xf32>
    %2 = tpu.matmul %0, %1, %cst {dimension_numbers = #tpu.dot_dimension_numbers<[1], [0], [0], [1], [0, 0, 1, 1], [], []>, precision = #tpu.contract_precision<fp32>} : vector<8x40xf32>, vector<40x129xf32>, vector<8x129xf32> -> vector<8x129xf32>
    %c0_3 = arith.constant 0 : index
    %c0_4 = arith.constant 0 : index
    %3 = vector.load %arg3[%c0_3, %c0_4] : memref<8x129xf32, #tpu.memory_space<vmem>>, vector<8x129xf32>
    tpu.vector_store %arg3[%c0_3, %c0_4], %2 {strides = array<i32>} : memref<8x129xf32, #tpu.memory_space<vmem>>, vector<8x129xf32>,
    return
  }
  func.func @transform_0(%arg0: i32) -> (i32, i32) {
    %c0_i32 = arith.constant 0 : i32
    %c0_i32_0 = arith.constant 0 : i32
    return %arg0, %c0_i32 : i32, i32
  }
  func.func @transform_1(%arg0: i32) -> (i32, i32) {
    %c0_i32 = arith.constant 0 : i32
    %c0_i32_0 = arith.constant 0 : i32
    %c0_i32_1 = arith.constant 0 : i32
    return %c0_i32, %c0_i32_0 : i32, i32
  }
  func.func @transform_2(%arg0: i32) -> (i32, i32) {
    %c0_i32 = arith.constant 0 : i32
    %c0_i32_0 = arith.constant 0 : i32
    return %arg0, %c0_i32 : i32, i32
  }
}

</mosaic_0001>

<bundles_post_ra>
// kernel: tpu_custom_call.1
= control target key start
LH: loop header
LB: loop body
LE: loop exit
PB: predicated region body
PF: predicated region fallthrough
CT: control target
= control target key end

     0   :  { %7 = vsyncpa [#allocation3], 0  ;;  %s1375_s0 = inlined_call_operand.hbm [shape: f32[26,40], index: 0, kind: input, shape index: {}]   ;;  %s1376_s1 = inlined_call_operand.hbm [shape: f32[40,129], index: 1, kind: input, shape index: {}]   ;;  %s1377_s2 = inlined_call_operand.hbm [shape: f32[26,129], index: 2, kind: output, shape index: {}]  }
   0x1   :  { %9 = vsyncpa [#allocation3 + $0x1], 0 }
   0x2   :  { %10 = vsyncpa [#allocation6], 0 }
   0x3   :  { %11 = vsyncpa [#allocation4], 0 }
   0x4   :  { %13 = vsyncpa [#allocation4 + $0x1], 0  ;;  %s1077_s9 = smov 0   ;;  %s1079_s10 = smov 0  }
   0x5   :  { %s1081_s11 = smov 0   ;;  %s1083_s12 = smov 0  }
   0x6 LB: > { %s1098_s13 = sadd.s32 4294967295, %s1054_s12   ;;  %s856_s14 = sadd.s32 4294967294, %s1054_s12   ;;  %s1054_s12 = sphi %s1083_s12, %s1398_s12   ;;  %s1050_s11 = sphi %s1081_s11, %s1397_s11   ;;  %s1046_s10 = sphi %s1079_s10, %s1396_s10   ;;  %s1042_s9 = sphi %s1077_s9, %s1395_s9  }
   0x7   : > { %p39_p0 = scmp.ne.s32.totalorder %s1046_s10, %s1042_s9  ;;  %p1378_p1 = scmp.eq.s32.totalorder %s1098_s13, 0 }
   0x8   : > { %p90_p3 = scmp.eq.s32.totalorder %s856_s14, 3  ;;  %p857_p5 = scmp.ge.s32.totalorder %s1054_s12, 1 }
   0x9   : > { %p1107_p4 = por %p1378_p1, %p39_p0  ;;  %p97_p7 = scmp.lt.s32.totalorder %s1054_s12, 5 }
   0xa   : > { %p1112_p6 = por %p90_p3, %p39_p0  ;;  %s1056_s18 = smov [#allocation5]  }
   0xb   : > { %s1382_s15 = scalar_select %p1107_p4, 1, 0 }
   0xc   : > { %s1383_s16 = scalar_select %p1112_p6, 1, 0 }
   0xd   : > { %p1117_p8 = pnand %p857_p5, %p97_p7  ;;  %s109_s19 = sshll.u32 %s1056_s18, 4  ;;  %s110_s19 = int_to_ptr.vmem [resolvable:$true] %s109_s19 }
   0xe   : > { %s1130_s21 = sadd.s32 1, %s1054_s12   ;;  %s26_s22 = sadd.s32 1, %s1050_s11 }
   0xf   : > { %s1384_s17 = scalar_select %p1117_p8, 1, 0 }
  0x10   : > { %p880_p9 = pneg %p1117_p8  ;;  %s23_s23 = ssub.s32 %s1054_s12, %s1130_s21 }
  0x11   : > { %s943_s24 = scalar_lea.vmem %s110_s19, 1280  ;;  %p951_p3 = scmp.lt.s32.totalorder %s110_s19, %s110_s19 }
  0x12   : > { %p1125_p10 = pnand %p880_p9, %p1378_p1  ;;  %p944_p12 = scmp.ne.s32.totalorder %s110_s19, %s943_s24 }
  0x13   : > { %p952_p5 = scmp.lt.s32.totalorder %s943_s24, %s943_s24 }
  0x14   : > { %p934_p11 = pneg %p1125_p10 }
  0x15   : > { %p953_p7 = por %p952_p5, %p951_p3 }
  0x16   : > { %p946_p13 = pnand %p944_p12, %p934_p11 }
  0x18   : > { %p947_p0 = pneg %p946_p13 }
  0x1a   : > { %p954_p2 = pnand %p953_p7, %p947_p0 }
  0x1c   : > { %957 = shalt.err (!%p954_p2)
}
  0x1d   : > { %s1057_s25 = smov 256   ;;  %s1058_s26 = smov 16  }
  0x1e   : > { %883 = dma.hbm_to_vmem [thread:$0]  (!%p1125_p10), %s1376_s1, 1280, %s110_s19, [#allocation6], %s1057_s25, %s1057_s25, %s1058_s26  }
  0x1f   : > { %p24_p9 = scmp.eq.s32.totalorder %s23_s23, 0  ;;  %p33_p11 = scmp.ne.s32.totalorder %s1050_s11, %s1046_s10 }
  0x20   : > { %p34_p12 = scmp.eq.s32.totalorder %s1054_s12, 0  ;;  %p893_p2 = scmp.lt.s32.totalorder %s1054_s12, 4 }
  0x21   : > { %s1147_s29 = scalar_select %p24_p9, %s1050_s11, %s26_s22  }
  0x22   : > { %p35_p13 = por %p34_p12, %p33_p11  ;;  %p1386_p0 = scmp.eq.s32.totalorder %s1098_s13, 3 }
  0x23   : > { %s123_s3 = sand.u32 1, %s1050_s11   ;;  %s861_s4 = sshll.u32 %s1054_s12, 7 }
  0x24   : > { %p1151_p3 = por %p1386_p0, %p33_p11  ;;  %s860_s5 = sshll.u32 %s123_s3, 3 }
  0x25   : > { %s1160_s8 = scalar_lea.hbm %s1375_s0, %s861_s4  ;;  %s127_s14 = scalar_lea.vmem [#allocation2], %s860_s5 }
  0x26   : > { %s1387_s30 = scalar_select %p1151_p3, 1, 0 }
  0x27   : > { %s134_s18 = sshll.u32 %s127_s14, 4  ;;  %p1162_p10 = pnand %p893_p2, %p35_p13  ;;  %s135_s18 = int_to_ptr.vmem [resolvable:$true] %s134_s18 }
  0x28   : > { %s124_s20 = scalar_lea.sflag [#allocation3], %s123_s3  ;;  %s958_s22 = scalar_lea.hbm %s1160_s8, 128 }
  0x29   : > { %p959_p5 = scmp.ne.s32.totalorder %s1160_s8, %s958_s22  ;;  %p960_p7 = pneg %p1162_p10 }
  0x2a   : > { %s963_s25 = scalar_lea.hbm %s1375_s0, 512  ;;  %p964_p12 = scmp.lt.s32.totalorder %s1160_s8, %s1375_s0 }
  0x2b   : > { %p961_p9 = pnand %p960_p7, %p959_p5  ;;  %p965_p2 = scmp.lt.s32.totalorder %s963_s25, %s958_s22 }
  0x2d   : > { %p962_p11 = pneg %p961_p9  ;;  %p966_p13 = por %p965_p2, %p964_p12 }
  0x2f   : > { %p967_p0 = pnand %p966_p13, %p962_p11 }
  0x31   : > { %970 = shalt.err (!%p967_p0)
}
  0x32   : > { %s971_s28 = scalar_lea.vmem %s135_s18, 128  ;;  %s1059_s3 = smov [#allocation2]  }
  0x33   : > { %p972_p1 = scmp.ne.s32.totalorder %s135_s18, %s971_s28  ;;  %s976_s4 = sshll.u32 %s1059_s3, 4  ;;  %s977_s4 = int_to_ptr.vmem [resolvable:$false] %s976_s4 }
  0x34   : > { %s978_s5 = scalar_lea.vmem %s977_s4, 256  ;;  %p979_p5 = scmp.lt.s32.totalorder %s135_s18, %s977_s4 }
  0x35   : > { %p974_p6 = pnand %p972_p1, %p960_p7  ;;  %p980_p9 = scmp.lt.s32.totalorder %s978_s5, %s971_s28 }
  0x37   : > { %p975_p3 = pneg %p974_p6  ;;  %p981_p4 = por %p980_p9, %p979_p5 }
  0x39   : > { %p982_p8 = pnand %p981_p4, %p975_p3 }
  0x3b   : > { %985 = shalt.err (!%p982_p8)
}
  0x3c   : > { %887 = dma.hbm_to_vmem [thread:$0]  (!%p1162_p10), %s1160_s8, 128, %s135_s18, %s124_s20  }
  0x3d   : > { %p1389_p11 = scmp.ne.s32.totalorder %s1384_s17, 0 }
  0x3e   : > { %s1183_s6 = sand.u32 (!%p1389_p11), 1, %s1046_s10   ;;  %p1390_p1 = scmp.ne.s32.totalorder (!%p1389_p11), %s1382_s15, 0 }
  0x3f   : > { %143 = sbr.rel (%p1389_p11) target bundleno = 328 (0x148), region = 28  ;;  %s863_s7 = sshll.u32 (!%p1389_p11), %s1183_s6, 3 }
  0x40   : > { %s146_s14 = scalar_lea.sflag (!%p1389_p11), [#allocation3], %s1183_s6  ;;  %s149_s22 = scalar_lea.vmem (!%p1389_p11), [#allocation2], %s863_s7 }
  0x44   : > { %1029 = dma.done.wait (%p1390_p1), %s146_s14, 128  }
  0x45   : > { %1031 = vsyncadd (%p1390_p1), %s146_s14, 4294967168  ;;  %p1391_p4 = scmp.eq.s32.totalorder %s1098_s13, 0 }
  0x47   : > { %1033 = dma.done.wait (%p1391_p4), [#allocation6], 1280   ;;  %p1392_p6 = pmov %p1391_p4 }
  0x48   : > { %v1060_v0 = vmov 0.0   ;;  %v184_v1 = vld [vmem:[#allocation5 + $0x48] sm:$0xff]  ;;  %v183_v2 = vld [vmem:[#allocation5 + $0x40] sm:$0xff]  ;;  %v182_v3 = vld [vmem:[#allocation5 + $0x38] sm:$0xff]  ;;  %vm185_vm0 = vcmask 326656   ;;  %s865_s15 = sshll.u32 %s1183_s6, 4 }
  0x49   : > { %1035 = vsyncadd (%p1392_p6), [#allocation6], 4294966016  ;;  %263 = vmatprep.mubr.f32.mxu0 %v1060_v0  ;;  %389 = vmatprep.mubr.f32.mxu1 %v1060_v0  ;;  %v1197_v4 = vand.u32 4294901760, %v184_v1  ;;  %v1199_v5 = vand.u32 4294901760, %v183_v2  ;;  %v1201_v6 = vand.u32 4294901760, %v182_v3  ;;  %v181_v7 = vld [vmem:[#allocation5 + $0x30] sm:$0xff] }
  0x4a   : > { %v180_v8 = vld [vmem:[#allocation5 + $0x28] sm:$0xff]  ;;  %v179_v9 = vld [vmem:[#allocation5 + $0x20] sm:$0xff]  ;;  %v1203_v10 = vand.u32 4294901760, %v181_v7  ;;  %v178_v13 = vld [vmem:[#allocation5 + $0x18] sm:$0xff]  ;;  %s871_s17 = sshll.u32 %s1098_s13, 8  ;;  %s173_s8 = scalar_lea.vmem [#allocation7], %s865_s15 }
  0x4b   : > { %v1205_v11 = vand.u32 4294901760, %v180_v8  ;;  %v1207_v12 = vand.u32 4294901760, %v179_v9  ;;  %v177_v14 = vld [vmem:[#allocation5 + $0x10] sm:$0xff]  ;;  %v176_v15 = vld [vmem:[#allocation5 + $0x8] sm:$0xff]  ;;  %212 = vmatprep.subr.mxu0 %v1197_v4  ;;  %v1210_v16 = vand.u32 4294901760, %v178_v13  ;;  %v1217_v19 = vsub.f32 %v184_v1, %v1197_v4  ;;  %v175_v20 = vld [vmem:[#allocation5] sm:$0xff]  ;;  %s774_s23 = scalar_lea.hbm %s1377_s2, %s871_s17 }
  0x4c   : > { %v1212_v17 = vand.u32 4294901760, %v177_v14  ;;  %v1214_v18 = vand.u32 4294901760, %v176_v15  ;;  %v174_v21 = vld [vmem:[%s149_s22] sm:$0xff]  ;;  %214 = vmatpush1.msra.mxu0 %v1199_v5  ;;  %v1220_v22 = vand.u32 4294901760, %v175_v20  ;;  %v1223_v23 = vsub.f32 %v183_v2, %v1199_v5  ;;  %s776_s18 = sshll.u32 %s173_s8, 4  ;;  %s762_s24 = scalar_lea.sflag [#allocation4], %s1183_s6  ;;  %s777_s18 = int_to_ptr.vmem [resolvable:$true] %s776_s18 }
  0x4d   : > { %v1226_v24 = vsub.f32 %v182_v3, %v1201_v6  ;;  %v187_v25 = vsel %vm185_vm0, %v174_v21, 0  ;;  %216 = vmatprep.subr.mxu0 %v1201_v6  ;;  %v299_v26 = vand.u32 4294901760, %v1217_v19  ;;  %v1234_v28 = vsub.f32 %v181_v7, %v1203_v10  ;;  %s986_s25 = scalar_lea.vmem %s777_s18, 256  ;;  %p1393_p3 = scmp.ne.s32.totalorder %s1387_s30, 0 }
  0x4e   : > { %v1231_v27 = vand.u32 4294901760, %v187_v25  ;;  %v1237_v29 = vsub.f32 %v180_v8, %v1205_v11  ;;  %218 = vmatpush1.msra.mxu0 %v1203_v10  ;;  %v305_v30 = vand.u32 4294901760, %v1223_v23  ;;  %v1243_v32 = vsub.f32 %v179_v9, %v1207_v12  ;;  %p987_p8 = scmp.ne.s32.totalorder %s777_s18, %s986_s25  ;;  %s1061_s13 = smov [#allocation7]  }
  0x4f   : > { %v311_v31 = vand.u32 4294901760, %v1226_v24  ;;  %v1246_v33 = vsub.f32 %v178_v13, %v1210_v16  ;;  %220 = vmatprep.subr.mxu0 %v1205_v11  ;;  %v300_v34 = vsub.f32 %v1217_v19, %v299_v26  ;;  %v317_v36 = vand.u32 4294901760, %v1234_v28  ;;  %s990_s26 = sshll.u32 %s1061_s13, 4  ;;  %s991_s26 = int_to_ptr.vmem [resolvable:$false] %s990_s26 }
  0x50   : > { %v1253_v35 = vsub.f32 %v187_v25, %v1231_v27  ;;  %v323_v37 = vand.u32 4294901760, %v1237_v29  ;;  %222 = vmatpush1.msra.mxu0 %v1207_v12  ;;  %v306_v38 = vsub.f32 %v1223_v23, %v305_v30  ;;  %v329_v40 = vand.u32 4294901760, %v1243_v32  ;;  %p988_p10 = pnand %p987_p8, %p1393_p3  ;;  %s992_s27 = scalar_lea.vmem %s991_s26, 512 }
  0x51   : > { %v312_v39 = vsub.f32 %v1226_v24, %v311_v31  ;;  %v335_v41 = vand.u32 4294901760, %v1246_v33  ;;  %224 = vmatprep.subr.mxu0 %v1210_v16  ;;  %v301_v42 = vand.u32 4294901760, %v300_v34  ;;  %v318_v44 = vsub.f32 %v1234_v28, %v317_v36  ;;  %p993_p12 = scmp.lt.s32.totalorder %s777_s18, %s991_s26  ;;  %p994_p2 = scmp.lt.s32.totalorder %s992_s27, %s986_s25 }
  0x52   : > { %v266_v43 = vand.u32 4294901760, %v1253_v35  ;;  %v324_v45 = vsub.f32 %v1237_v29, %v323_v37  ;;  %226 = vmatpush1.msra.mxu0 %v1212_v17  ;;  %v307_v46 = vand.u32 4294901760, %v306_v38  ;;  %v330_v48 = vsub.f32 %v1243_v32, %v329_v40  ;;  %p989_p7 = pneg %p988_p10 }
  0x53   : > { %v313_v47 = vand.u32 4294901760, %v312_v39  ;;  %v336_v49 = vsub.f32 %v1246_v33, %v335_v41  ;;  %228 = vmatprep.subr.mxu0 %v1214_v18  ;;  %302 = vmatprep.subr.mxu1 %v301_v42  ;;  %v319_v51 = vand.u32 4294901760, %v318_v44  ;;  %v340_v53 = vsub.f32 %v177_v14, %v1212_v17  ;;  %p995_p13 = por %p994_p2, %p993_p12 }
  0x54   : > { %v267_v50 = vsub.f32 %v1253_v35, %v266_v43  ;;  %v325_v52 = vand.u32 4294901760, %v324_v45  ;;  %230 = vmatpush1.msra.mxu0 %v1220_v22  ;;  %308 = vmatpush1.msra.mxu1 %v307_v46  ;;  %v331_v54 = vand.u32 4294901760, %v330_v48  ;;  %v346_v55 = vsub.f32 %v176_v15, %v1214_v18 }
  0x55   : > { %v352_v56 = vsub.f32 %v175_v20, %v1220_v22  ;;  %314 = vmatprep.subr.mxu1 %v313_v47  ;;  %421 = vmatprep.subr.mxu0 %v1217_v19  ;;  %v337_v58 = vand.u32 4294901760, %v336_v49  ;;  %v341_v59 = vand.u32 4294901760, %v340_v53  ;;  %vm759_vm1 = vcmask 7168   ;;  %p996_p0 = pnand %p995_p13, %p989_p7 }
  0x56   : > { %v268_v57 = vand.u32 4294901760, %v267_v50  ;;  %320 = vmatpush1.msra.mxu1 %v319_v51  ;;  %v347_v60 = vand.u32 4294901760, %v346_v55 }
  0x57   : > { %v353_v61 = vand.u32 4294901760, %v352_v56  ;;  %326 = vmatprep.subr.mxu1 %v325_v52  ;;  %v342_v62 = vsub.f32 %v340_v53, %v341_v59 }
  0x58   : > { %269 = vmatmul.mubr.f32.vlgmr.msra.gmra.mxu0 %v268_v57  ;;  %332 = vmatpush1.msra.mxu1 %v331_v54  ;;  %v348_v63 = vsub.f32 %v346_v55, %v347_v60 }
  0x59   : > { %424 = vmatpush1.msra.mxu0 %v1223_v23  ;;  %v354_v1 = vsub.f32 %v352_v56, %v353_v61  ;;  %338 = vmatprep.subr.mxu1 %v337_v58  ;;  %v343_v2 = vand.u32 4294901760, %v342_v62 }
  0x5a   : > { %427 = vmatprep.subr.mxu0 %v1226_v24  ;;  %v349_v3 = vand.u32 4294901760, %v348_v63  ;;  %481 = vmatprep.mubr.f32.mxu0 %v1060_v0 }
  0x5b   : > { %430 = vmatpush1.msra.mxu0 %v1234_v28  ;;  %v355_v7 = vand.u32 4294901760, %v354_v1  ;;  %344 = vmatpush1.msra.mxu1 %v343_v2 }
  0x5c   : > { %433 = vmatprep.subr.mxu0 %v1237_v29  ;;  %350 = vmatprep.subr.mxu1 %v349_v3 }
  0x5d   : > { %436 = vmatpush1.msra.mxu0 %v1243_v32  ;;  %356 = vmatpush1.msra.mxu1 %v355_v7 }
  0x5e   : > { %439 = vmatprep.subr.mxu0 %v1246_v33  ;;  %391 = vmatmul.mubr.f32.vlgmr.msra.gmra.mxu1 %v1231_v27 }
  0x5f   : > { %442 = vmatpush1.msra.mxu0 %v340_v53  ;;  %513 = vmatprep.subr.mxu1 %v1197_v4 }
  0x60   : > { %445 = vmatprep.subr.mxu0 %v346_v55  ;;  %515 = vmatpush1.msra.mxu1 %v1199_v5 }
  0x61   : > { %448 = vmatpush1.msra.mxu0 %v352_v56  ;;  %517 = vmatprep.subr.mxu1 %v1201_v6 }
  0x62   : > { %484 = vmatmul.mubr.f32.vlgmr.msra.gmra.mxu0 %v1253_v35  ;;  %599 = vmatprep.subr.mxu0 %v299_v26 }
  0x63   : > { %519 = vmatpush1.msra.mxu1 %v1203_v10  ;;  %603 = vmatpush1.msra.mxu0 %v305_v30 }
  0x64   : > { %521 = vmatprep.subr.mxu1 %v1205_v11  ;;  %607 = vmatprep.subr.mxu0 %v311_v31 }
  0x65   : > { %523 = vmatpush1.msra.mxu1 %v1207_v12  ;;  %611 = vmatpush1.msra.mxu0 %v317_v36 }
  0x66   : > { %525 = vmatprep.subr.mxu1 %v1210_v16  ;;  %615 = vmatprep.subr.mxu0 %v323_v37 }
  0x67   : > { %527 = vmatpush1.msra.mxu1 %v1212_v17  ;;  %619 = vmatpush1.msra.mxu0 %v329_v40 }
  0x68   : > { %529 = vmatprep.subr.mxu1 %v1214_v18  ;;  %623 = vmatprep.subr.mxu0 %v335_v41 }
  0x69   : > { %531 = vmatpush1.msra.mxu1 %v1220_v22  ;;  %564 = vmatprep.mubr.f32.mxu1 %v1060_v0 }
  0x6a   : > { %627 = vmatpush1.msra.mxu0 %v341_v59  ;;  %568 = vmatmul.mubr.f32.vlgmr.msra.gmra.mxu1 %v266_v43 }
  0x6b   : > { %631 = vmatprep.subr.mxu0 %v347_v60  ;;  %699 = vmatprep.subr.mxu1 %v1197_v4 }
  0x6c   : > { %635 = vmatpush1.msra.mxu0 %v353_v61  ;;  %668 = vmatprep.mubr.f32.mxu0 %v1060_v0 }
  0x6d   : > { %701 = vmatpush1.msra.mxu1 %v1199_v5  ;;  %670 = vmatmul.mubr.f32.vlgmr.msra.gmra.mxu0 %v1231_v27 }
  0x6e   : > { %703 = vmatprep.subr.mxu1 %v1201_v6  ;;  %750 = vmatprep.mubr.f32.mxu1 %v1060_v0 }
  0x6f   : > { %705 = vmatpush1.msra.mxu1 %v1203_v10 }
  0x70   : > { %707 = vmatprep.subr.mxu1 %v1205_v11 }
  0x71   : > { %709 = vmatpush1.msra.mxu1 %v1207_v12 }
  0x72   : > { %711 = vmatprep.subr.mxu1 %v1210_v16 }
  0x73   : > { %713 = vmatpush1.msra.mxu1 %v1212_v17 }
  0x74   : > { %715 = vmatprep.subr.mxu1 %v1214_v18 }
  0x75   : > { %717 = vmatpush1.msra.mxu1 %v1220_v22 }
  0x76   : > { %752 = vmatmul.mubr.f32.vlgmr.msra.gmra.mxu1 %v1231_v27 }
 0x118   : > { %v270_v4 = vpop.f32.mrf.mxu0 }
 0x11a   : > { %v272_v5 = vpop.f32.mrf.mxu0 }
 0x11e   : > { %v392_v6 = vpop.f32.mrf.mxu1 }
 0x11f   : > { %v393_v9 = vadd.f32 %v392_v6, %v270_v4 }
 0x120   : > { %v394_v8 = vpop.f32.mrf.mxu1 }
 0x121   : > { %v395_v11 = vadd.f32 %v394_v8, %v272_v5 }
 0x122   : > { %v485_v0 = vpop.f32.mrf.mxu0 }
 0x123   : > { %v486_v13 = vadd.f32 %v485_v0, %v393_v9 }
 0x124   : > { %v487_v12 = vpop.f32.mrf.mxu0 }
 0x125   : > { %v488_v16 = vadd.f32 %v487_v12, %v395_v11 }
 0x12a   : > { %v569_v10 = vpop.f32.mrf.mxu1 }
 0x12b   : > { %v570_v17 = vadd.f32 %v569_v10, %v486_v13 }
 0x12c   : > { %v571_v14 = vpop.f32.mrf.mxu1 }
 0x12d   : > { %v671_v15 = vpop.f32.mrf.mxu0  ;;  %v572_v18 = vadd.f32 %v571_v14, %v488_v16 }
 0x12e   : > { %v672_v20 = vadd.f32 %v671_v15, %v570_v17 }
 0x12f   : > { %v673_v19 = vpop.f32.mrf.mxu0 }
 0x130   : > { %v674_v22 = vadd.f32 %v673_v19, %v572_v18 }
 0x136   : > { %v753_v21 = vpop.f32.mrf.mxu1 }
 0x137   : > { %v754_v23 = vadd.f32 %v753_v21, %v672_v20 }
 0x138   : > { %v755_v24 = vpop.f32.mrf.mxu1 }
 0x139   : > { %758 = vst [vmem:[%s173_s8] sm:$0xff] %v754_v23  ;;  %v756_v25 = vadd.f32 %v755_v24, %v674_v22 }
 0x13b   : > { %760 = vst.msk [vmem:[%s173_s8 + $0x8] sm:$0xff] %vm759_vm1, %v756_v25 }
 0x13c   : > { %999 = shalt.err (!%p996_p0)
}
 0x13d   : > { %s1000_s28 = scalar_lea.hbm %s774_s23, 256  ;;  %s1004_s5 = scalar_lea.hbm %s1377_s2, 1024 }
 0x13e   : > { %p1001_p5 = scmp.ne.s32.totalorder %s774_s23, %s1000_s28  ;;  %p1005_p1 = scmp.lt.s32.totalorder %s774_s23, %s1377_s2 }
 0x13f   : > { %p1006_p4 = scmp.lt.s32.totalorder %s1004_s5, %s1000_s28 }
 0x140   : > { %p1002_p9 = pnand %p1001_p5, %p1393_p3 }
 0x141   : > { %p1007_p6 = por %p1006_p4, %p1005_p1 }
 0x142   : > { %p1003_p11 = pneg %p1002_p9 }
 0x144   : > { %p1008_p8 = pnand %p1007_p6, %p1003_p11 }
 0x146   : > { %1011 = shalt.err (!%p1008_p8)
}
 0x147   : > { %878 = dma.vmem_to_hbm [thread:$0]  (%p1393_p3), %s777_s18, 256, %s774_s23, %s762_s24  }
 0x148 PF: > { %p895_p10 = scmp.ge.s32.totalorder %s1054_s12, 2  ;;  %s788_s14 = sand.u32 1, %s1042_s9  }
 0x149   : > { %p1394_p7 = scmp.ne.s32.totalorder %s1383_s16, 0  ;;  %s789_s22 = scalar_lea.sflag [#allocation4], %s788_s14 }
 0x14b   : > { %p889_p12 = pnand %p895_p10, %p1394_p7 }
 0x14d   : > { %p890_p2 = pneg %p889_p12 }
 0x14f   : > { %1037 = dma.done.wait (%p890_p2), %s789_s22, 256  }
 0x150   : > { %1039 = vsyncadd (%p890_p2), %s789_s22, 4294967040  ;;  %p16_p13 = scmp.ge.s32.totalorder %s1130_s21, 6   ;;  %s1395_s9 = smov %s1046_s10 }
 0x151   : > { %s1396_s10 = smov %s1050_s11  ;;  %s1397_s11 = smov %s1147_s29 }
 0x152   : > { %s1398_s12 = smov %s1130_s21  ;;  %18 = sbr.rel (!%p16_p13) target bundleno = 6 (0x6), region = 77 }
 0x157   :  { %794 = vsyncpa [#allocation3], 1 }
 0x158   :  { %796 = vsyncpa [#allocation3 + $0x1], 1 }
 0x159   :  { %797 = vsyncpa [#allocation6], 1 }
 0x15a   :  { %798 = vsyncpa [#allocation4], 1 }
 0x15b   :  { %800 = vsyncpa [#allocation4 + $0x1], 1 }

</bundles_post_ra>
